<compile_context>
chip_gen: v6e
topology: v6e:2x2x1
jax: 0.10.0
libtpu: 0.0.40
codegen_flags: <defaults>
</compile_context>

<pallas_src>
import functools

import jax
import jax.numpy as jnp
from jax.experimental import pallas as pl
from jax.experimental.pallas import tpu as pltpu


# ---------------------------------------------------------------------------
# Architecture helper (port of the PyTorch find_dims)
# ---------------------------------------------------------------------------
def find_dims(num_hid_mlp: int, in_dim: int, out_dim: int):
    dims = []
    s_len = 3
    for i in range(num_hid_mlp):
        if i == num_hid_mlp - 1:
            dims.append(out_dim)
            break
        if i >= num_hid_mlp - s_len:
            dims.append(dims[i - 1] - in_dim)
            continue
        if i < s_len:
            dims.append(in_dim * (i + 1))
            continue
        dims.append(dims[i - 1])
    return dims


# ---------------------------------------------------------------------------
# Pallas kernel: fused MLP forward for one batch tile
#   refs layout: x_ref, w0, b0, w1, b1, ..., w_{L-1}, b_{L-1}, out_ref
#   weights/biases are full VMEM-resident arrays (no per-step pipelining);
#   the last layer is pre-padded to a lane-dense (=>128) output width.
# ---------------------------------------------------------------------------
def mlp_kernel(*refs, num_layers: int):
    x_ref = refs[0]
    out_ref = refs[-1]
    wb_refs = refs[1:-1]

    h = x_ref[...].astype(jnp.float32)
    for layer in range(num_layers):
        w = wb_refs[2 * layer][...].astype(jnp.float32)
        b = wb_refs[2 * layer + 1][...].astype(jnp.float32)
        h = jnp.dot(h, w, preferred_element_type=jnp.float32) + b
        if layer < num_layers - 1:
            h = jnp.maximum(h, 0.0)  # ReLU between hidden layers
    out_ref[...] = h.astype(out_ref.dtype)


# ---------------------------------------------------------------------------
# Wrapper: pads batch / output lanes, builds specs, invokes pallas_call
# ---------------------------------------------------------------------------
def mlp_forward(x, weights, biases, *, batch_tile=256):
    batch, in_feat = x.shape
    num_layers = len(weights)
    out_feat = weights[-1].shape[1]

    # --- lane-dense output: pad final layer to a multiple of 128 columns ----
    out_pad = max(128, pl.cdiv(out_feat, 128) * 128)
    w_last = jnp.zeros((weights[-1].shape[0], out_pad), weights[-1].dtype)
    w_last = w_last.at[:, :out_feat].set(weights[-1])
    b_last = jnp.zeros((1, out_pad), biases[-1].dtype)
    b_last = b_last.at[:, :out_feat].set(biases[-1])
    weights = list(weights[:-1]) + [w_last]
    biases = list(biases[:-1]) + [b_last]

    # --- pad batch up to a multiple of batch_tile (sliced off afterwards) ---
    batch_tile = max(8, min(batch_tile, pl.cdiv(batch, 8) * 8))
    padded_batch = pl.cdiv(batch, batch_tile) * batch_tile
    if padded_batch != batch:
        x = jnp.concatenate(
            [x, jnp.zeros((padded_batch - batch, in_feat), x.dtype)], axis=0)

    grid = (padded_batch // batch_tile,)

    # x: tiled along batch. Weights/biases: whole-array VMEM residents
    # (no blocking, no double-buffering -> no per-step DMA bookkeeping).
    in_specs = [pl.BlockSpec((batch_tile, in_feat), lambda i: (i, 0))]
    for _w, _b in zip(weights, biases):
        in_specs.append(pl.BlockSpec(memory_space=pltpu.MemorySpace.VMEM))
        in_specs.append(pl.BlockSpec(memory_space=pltpu.MemorySpace.VMEM))

    out_spec = pl.BlockSpec((batch_tile, out_pad), lambda i: (i, 0))

    kernel = functools.partial(mlp_kernel, num_layers=num_layers)

    flat_params = []
    for w, b in zip(weights, biases):
        flat_params.extend([w, b])

    out = pl.pallas_call(
        kernel,
        out_shape=jax.ShapeDtypeStruct((padded_batch, out_pad), x.dtype),
        grid=grid,
        in_specs=in_specs,
        out_specs=out_spec,
        compiler_params=pltpu.CompilerParams(
            dimension_semantics=("parallel",),
            vmem_limit_bytes=32 * 1024 * 1024,  # safe on v7x (64 MiB physical)
        ),
    )(x, *flat_params)

    return out[:batch, :out_feat]


# ---------------------------------------------------------------------------
# Parameter init + demo
# ---------------------------------------------------------------------------
def init_params(dims, key):
    """Deterministic Linear-layer params for consecutive dim pairs."""
    weights, biases = [], []
    for i in range(len(dims) - 1):
        key, kw, kb = jax.random.split(key, 3)
        fan_in = dims[i]
        scale = 1.0 / jnp.sqrt(jnp.float32(fan_in))
        w = jax.random.uniform(kw, (dims[i], dims[i + 1]), jnp.float32,
                               minval=-scale, maxval=scale)
        b = jax.random.uniform(kb, (1, dims[i + 1]), jnp.float32,
                               minval=-scale, maxval=scale)
        weights.append(w)
        biases.append(b)
    return weights, biases


if __name__ == "__main__":
    # ModelParams: exp_type='wall', num_hid_mlp=6; in_classes=8, out_classes=4
    num_hid_mlp = 6
    in_classes = 8
    out_classes = 4
    dims = find_dims(num_hid_mlp, in_classes, out_classes)   # [8, 16, 24, 16, 8, 4]

    key = jax.random.PRNGKey(0)
    key, kx = jax.random.split(key)
    batch = 512            # 2 grid steps at batch_tile=256 (feeds both v7x TCs)
    x = jax.random.normal(kx, (batch, dims[0]), jnp.float32)

    weights, biases = init_params(dims, key)

    out = mlp_forward(x, weights, biases, batch_tile=256)
    out = jax.block_until_ready(out)
    assert out.shape == (batch, out_classes), out.shape

    # Cross-check against plain-JAX reference of the same MLP.
    h = x
    for i, (w, b) in enumerate(zip(weights, biases)):
        h = h @ w + b
        if i < len(weights) - 1:
            h = jnp.maximum(h, 0.0)
    assert jnp.allclose(out, h, atol=1e-5, rtol=1e-5)

    print("KERNEL_OK")
</pallas_src>

<mosaic_0001>
module attributes {stable_mosaic.version = 11 : i64} {
  func.func @mlp_kernel(%arg0: i32, %arg1: memref<256x8xf32, #tpu.memory_space<vmem>>, %arg2: memref<8x16xf32, #tpu.memory_space<vmem>>, %arg3: memref<1x16xf32, #tpu.memory_space<vmem>>, %arg4: memref<16x24xf32, #tpu.memory_space<vmem>>, %arg5: memref<1x24xf32, #tpu.memory_space<vmem>>, %arg6: memref<24x16xf32, #tpu.memory_space<vmem>>, %arg7: memref<1x16xf32, #tpu.memory_space<vmem>>, %arg8: memref<16x8xf32, #tpu.memory_space<vmem>>, %arg9: memref<1x8xf32, #tpu.memory_space<vmem>>, %arg10: memref<8x128xf32, #tpu.memory_space<vmem>>, %arg11: memref<1x128xf32, #tpu.memory_space<vmem>>, %arg12: memref<256x128xf32, #tpu.memory_space<vmem>>) attributes {dimension_semantics = [#tpu.dimension_semantics<parallel>], iteration_bounds = array<i64: 2>, scalar_prefetch = 0 : i64, scratch_operands = 0 : i64, tpu.core_type = #tpu.core_type<tc>, window_params = [{transform_indices = @transform_0, window_bounds = array<i64: 256, 8>}, {pipeline_mode = #tpu.pipeline_mode<synchronous>, transform_indices = @transform_1, window_bounds = array<i64: 8, 16>}, {pipeline_mode = #tpu.pipeline_mode<synchronous>, transform_indices = @transform_2, window_bounds = array<i64: 1, 16>}, {pipeline_mode = #tpu.pipeline_mode<synchronous>, transform_indices = @transform_3, window_bounds = array<i64: 16, 24>}, {pipeline_mode = #tpu.pipeline_mode<synchronous>, transform_indices = @transform_4, window_bounds = array<i64: 1, 24>}, {pipeline_mode = #tpu.pipeline_mode<synchronous>, transform_indices = @transform_5, window_bounds = array<i64: 24, 16>}, {pipeline_mode = #tpu.pipeline_mode<synchronous>, transform_indices = @transform_6, window_bounds = array<i64: 1, 16>}, {pipeline_mode = #tpu.pipeline_mode<synchronous>, transform_indices = @transform_7, window_bounds = array<i64: 16, 8>}, {pipeline_mode = #tpu.pipeline_mode<synchronous>, transform_indices = @transform_8, window_bounds = array<i64: 1, 8>}, {pipeline_mode = #tpu.pipeline_mode<synchronous>, transform_indices = @transform_9, window_bounds = array<i64: 8, 128>}, {pipeline_mode = #tpu.pipeline_mode<synchronous>, transform_indices = @transform_10, window_bounds = array<i64: 1, 128>}, {transform_indices = @transform_11, window_bounds = array<i64: 256, 128>}]} {
    %c0 = arith.constant 0 : index
    %c0_0 = arith.constant 0 : index
    %0 = vector.load %arg1[%c0, %c0_0] : memref<256x8xf32, #tpu.memory_space<vmem>>, vector<256x8xf32>
    %c0_1 = arith.constant 0 : index
    %c0_2 = arith.constant 0 : index
    %1 = vector.load %arg2[%c0_1, %c0_2] : memref<8x16xf32, #tpu.memory_space<vmem>>, vector<8x16xf32>
    %c0_3 = arith.constant 0 : index
    %c0_4 = arith.constant 0 : index
    %2 = vector.load %arg3[%c0_3, %c0_4] : memref<1x16xf32, #tpu.memory_space<vmem>>, vector<1x16xf32>
    %cst = arith.constant dense<0.000000e+00> : vector<256x16xf32>
    %3 = tpu.matmul %0, %1, %cst {dimension_numbers = #tpu.dot_dimension_numbers<[1], [0], [0], [1], [0, 0, 1, 1], [], []>} : vector<256x8xf32>, vector<8x16xf32>, vector<256x16xf32> -> vector<256x16xf32>
    %4 = vector.broadcast %2 : vector<1x16xf32> to vector<256x16xf32>
    %5 = arith.addf %3, %4 : vector<256x16xf32>
    %cst_5 = arith.constant 0.000000e+00 : f32
    %6 = vector.broadcast %cst_5 : f32 to vector<256x16xf32>
    %7 = arith.maximumf %5, %6 : vector<256x16xf32>
    %c0_6 = arith.constant 0 : index
    %c0_7 = arith.constant 0 : index
    %8 = vector.load %arg4[%c0_6, %c0_7] : memref<16x24xf32, #tpu.memory_space<vmem>>, vector<16x24xf32>
    %c0_8 = arith.constant 0 : index
    %c0_9 = arith.constant 0 : index
    %9 = vector.load %arg5[%c0_8, %c0_9] : memref<1x24xf32, #tpu.memory_space<vmem>>, vector<1x24xf32>
    %cst_10 = arith.constant dense<0.000000e+00> : vector<256x24xf32>
    %10 = tpu.matmul %7, %8, %cst_10 {dimension_numbers = #tpu.dot_dimension_numbers<[1], [0], [0], [1], [0, 0, 1, 1], [], []>} : vector<256x16xf32>, vector<16x24xf32>, vector<256x24xf32> -> vector<256x24xf32>
    %11 = vector.broadcast %9 : vector<1x24xf32> to vector<256x24xf32>
    %12 = arith.addf %10, %11 : vector<256x24xf32>
    %cst_11 = arith.constant 0.000000e+00 : f32
    %13 = vector.broadcast %cst_11 : f32 to vector<256x24xf32>
    %14 = arith.maximumf %12, %13 : vector<256x24xf32>
    %c0_12 = arith.constant 0 : index
    %c0_13 = arith.constant 0 : index
    %15 = vector.load %arg6[%c0_12, %c0_13] : memref<24x16xf32, #tpu.memory_space<vmem>>, vector<24x16xf32>
    %c0_14 = arith.constant 0 : index
    %c0_15 = arith.constant 0 : index
    %16 = vector.load %arg7[%c0_14, %c0_15] : memref<1x16xf32, #tpu.memory_space<vmem>>, vector<1x16xf32>
    %cst_16 = arith.constant dense<0.000000e+00> : vector<256x16xf32>
    %17 = tpu.matmul %14, %15, %cst_16 {dimension_numbers = #tpu.dot_dimension_numbers<[1], [0], [0], [1], [0, 0, 1, 1], [], []>} : vector<256x24xf32>, vector<24x16xf32>, vector<256x16xf32> -> vector<256x16xf32>
    %18 = vector.broadcast %16 : vector<1x16xf32> to vector<256x16xf32>
    %19 = arith.addf %17, %18 : vector<256x16xf32>
    %cst_17 = arith.constant 0.000000e+00 : f32
    %20 = vector.broadcast %cst_17 : f32 to vector<256x16xf32>
    %21 = arith.maximumf %19, %20 : vector<256x16xf32>
    %c0_18 = arith.constant 0 : index
    %c0_19 = arith.constant 0 : index
    %22 = vector.load %arg8[%c0_18, %c0_19] : memref<16x8xf32, #tpu.memory_space<vmem>>, vector<16x8xf32>
    %c0_20 = arith.constant 0 : index
    %c0_21 = arith.constant 0 : index
    %23 = vector.load %arg9[%c0_20, %c0_21] : memref<1x8xf32, #tpu.memory_space<vmem>>, vector<1x8xf32>
    %cst_22 = arith.constant dense<0.000000e+00> : vector<256x8xf32>
    %24 = tpu.matmul %21, %22, %cst_22 {dimension_numbers = #tpu.dot_dimension_numbers<[1], [0], [0], [1], [0, 0, 1, 1], [], []>} : vector<256x16xf32>, vector<16x8xf32>, vector<256x8xf32> -> vector<256x8xf32>
    %25 = vector.broadcast %23 : vector<1x8xf32> to vector<256x8xf32>
    %26 = arith.addf %24, %25 : vector<256x8xf32>
    %cst_23 = arith.constant 0.000000e+00 : f32
    %27 = vector.broadcast %cst_23 : f32 to vector<256x8xf32>
    %28 = arith.maximumf %26, %27 : vector<256x8xf32>
    %c0_24 = arith.constant 0 : index
    %c0_25 = arith.constant 0 : index
    %29 = vector.load %arg10[%c0_24, %c0_25] : memref<8x128xf32, #tpu.memory_space<vmem>>, vector<8x128xf32>
    %c0_26 = arith.constant 0 : index
    %c0_27 = arith.constant 0 : index
    %30 = vector.load %arg11[%c0_26, %c0_27] : memref<1x128xf32, #tpu.memory_space<vmem>>, vector<1x128xf32>
    %cst_28 = arith.constant dense<0.000000e+00> : vector<256x128xf32>
    %31 = tpu.matmul %28, %29, %cst_28 {dimension_numbers = #tpu.dot_dimension_numbers<[1], [0], [0], [1], [0, 0, 1, 1], [], []>} : vector<256x8xf32>, vector<8x128xf32>, vector<256x128xf32> -> vector<256x128xf32>
    %32 = vector.broadcast %30 : vector<1x128xf32> to vector<256x128xf32>
    %33 = arith.addf %31, %32 : vector<256x128xf32>
    %c0_29 = arith.constant 0 : index
    %c0_30 = arith.constant 0 : index
    %34 = vector.load %arg12[%c0_29, %c0_30] : memref<256x128xf32, #tpu.memory_space<vmem>>, vector<256x128xf32>
    tpu.vector_store %arg12[%c0_29, %c0_30], %33 {strides = array<i32>} : memref<256x128xf32, #tpu.memory_space<vmem>>, vector<256x128xf32>,
    return
  }
  func.func @transform_0(%arg0: i32) -> (i32, i32) {
    %c0_i32 = arith.constant 0 : i32
    %c0_i32_0 = arith.constant 0 : i32
    return %arg0, %c0_i32 : i32, i32
  }
  func.func @transform_1(%arg0: i32) -> (i32, i32) {
    %c0_i32 = arith.constant 0 : i32
    %c0_i32_0 = arith.constant 0 : i32
    %c0_i32_1 = arith.constant 0 : i32
    return %c0_i32, %c0_i32_0 : i32, i32
  }
  func.func @transform_2(%arg0: i32) -> (i32, i32) {
    %c0_i32 = arith.constant 0 : i32
    %c0_i32_0 = arith.constant 0 : i32
    %c0_i32_1 = arith.constant 0 : i32
    return %c0_i32, %c0_i32_0 : i32, i32
  }
  func.func @transform_3(%arg0: i32) -> (i32, i32) {
    %c0_i32 = arith.constant 0 : i32
    %c0_i32_0 = arith.constant 0 : i32
    %c0_i32_1 = arith.constant 0 : i32
    return %c0_i32, %c0_i32_0 : i32, i32
  }
  func.func @transform_4(%arg0: i32) -> (i32, i32) {
    %c0_i32 = arith.constant 0 : i32
    %c0_i32_0 = arith.constant 0 : i32
    %c0_i32_1 = arith.constant 0 : i32
    return %c0_i32, %c0_i32_0 : i32, i32
  }
  func.func @transform_5(%arg0: i32) -> (i32, i32) {
    %c0_i32 = arith.constant 0 : i32
    %c0_i32_0 = arith.constant 0 : i32
    %c0_i32_1 = arith.constant 0 : i32
    return %c0_i32, %c0_i32_0 : i32, i32
  }
  func.func @transform_6(%arg0: i32) -> (i32, i32) {
    %c0_i32 = arith.constant 0 : i32
    %c0_i32_0 = arith.constant 0 : i32
    %c0_i32_1 = arith.constant 0 : i32
    return %c0_i32, %c0_i32_0 : i32, i32
  }
  func.func @transform_7(%arg0: i32) -> (i32, i32) {
    %c0_i32 = arith.constant 0 : i32
    %c0_i32_0 = arith.constant 0 : i32
    %c0_i32_1 = arith.constant 0 : i32
    return %c0_i32, %c0_i32_0 : i32, i32
  }
  func.func @transform_8(%arg0: i32) -> (i32, i32) {
    %c0_i32 = arith.constant 0 : i32
    %c0_i32_0 = arith.constant 0 : i32
    %c0_i32_1 = arith.constant 0 : i32
    return %c0_i32, %c0_i32_0 : i32, i32
  }
  func.func @transform_9(%arg0: i32) -> (i32, i32) {
    %c0_i32 = arith.constant 0 : i32
    %c0_i32_0 = arith.constant 0 : i32
    %c0_i32_1 = arith.constant 0 : i32
    return %c0_i32, %c0_i32_0 : i32, i32
  }
  func.func @transform_10(%arg0: i32) -> (i32, i32) {
    %c0_i32 = arith.constant 0 : i32
    %c0_i32_0 = arith.constant 0 : i32
    %c0_i32_1 = arith.constant 0 : i32
    return %c0_i32, %c0_i32_0 : i32, i32
  }
  func.func @transform_11(%arg0: i32) -> (i32, i32) {
    %c0_i32 = arith.constant 0 : i32
    %c0_i32_0 = arith.constant 0 : i32
    return %arg0, %c0_i32 : i32, i32
  }
}

</mosaic_0001>

<bundles_post_ra>
// kernel: tpu_custom_call.1
= control target key start
LH: loop header
LB: loop body
LE: loop exit
PB: predicated region body
PF: predicated region fallthrough
CT: control target
= control target key end

     0   :  { %s3636_s0 = inlined_call_operand.vmem [shape: f32[512,8], index: 0, kind: input, shape index: {}]   ;;  %s3637_s1 = inlined_call_operand.vmem [shape: f32[8,16], index: 1, kind: input, shape index: {}]   ;;  %s3638_s2 = inlined_call_operand.vmem [shape: f32[1,16], index: 2, kind: input, shape index: {}]   ;;  %s3639_s3 = inlined_call_operand.vmem [shape: f32[16,24], index: 3, kind: input, shape index: {}]   ;;  %s3640_s4 = inlined_call_operand.vmem [shape: f32[1,24], index: 4, kind: input, shape index: {}]   ;;  %s3641_s5 = inlined_call_operand.vmem [shape: f32[24,16], index: 5, kind: input, shape index: {}]   ;;  %s3642_s6 = inlined_call_operand.vmem [shape: f32[1,16], index: 6, kind: input, shape index: {}]   ;;  %s3643_s7 = inlined_call_operand.vmem [shape: f32[16,8], index: 7, kind: input, shape index: {}]   ;;  %s3644_s8 = inlined_call_operand.vmem [shape: f32[1,8], index: 8, kind: input, shape index: {}]   ;;  %s3645_s9 = inlined_call_operand.vmem [shape: f32[8,128], index: 9, kind: input, shape index: {}]   ;;  %s3646_s10 = inlined_call_operand.vmem [shape: f32[1,128], index: 10, kind: input, shape index: {}]   ;;  %s3647_s11 = inlined_call_operand.hbm [shape: f32[512,128], index: 11, kind: output, shape index: {}]  }
   0x1   :  { %3648 = sst [smem:[#allocation5_spill]] %s3636_s0 }
   0x2   :  { %16 = vsyncpa [#allocation3], 0 }
   0x3   :  { %18 = vsyncpa [#allocation3 + $0x1], 0  ;;  %s3081_s17 = smov 0   ;;  %s3083_s18 = smov 0  }
   0x4   :  { %s3085_s19 = smov 0   ;;  %s3087_s20 = smov 0  }
   0x5 LB: > { %s3102_s21 = sadd.s32 4294967295, %s3016_s20   ;;  %s2308_s22 = sadd.s32 4294967294, %s3016_s20   ;;  %s3016_s20 = sphi %s3087_s20, %s3655_s20   ;;  %s3012_s19 = sphi %s3085_s19, %s3654_s19   ;;  %s3008_s18 = sphi %s3083_s18, %s3653_s18   ;;  %s3004_s17 = sphi %s3081_s17, %s3652_s17  }
   0x6   : > { %s3106_s23 = sadd.s32 1, %s3016_s20   ;;  %s267_s24 = sadd.s32 1, %s3012_s19 }
   0x7   : > { %s264_s25 = ssub.s32 %s3016_s20, %s3106_s23  ;;  %p277_p0 = scmp.ne.s32.totalorder %s3012_s19, %s3008_s18 }
   0x8   : > { %p265_p1 = scmp.eq.s32.totalorder %s264_s25, 0  ;;  %p278_p2 = scmp.eq.s32.totalorder %s3102_s21, 1 }
   0x9   : > { %p283_p3 = scmp.ne.s32.totalorder %s3008_s18, %s3004_s17  ;;  %p284_p4 = scmp.eq.s32.totalorder %s2308_s22, 1 }
   0xa   : > { %s3117_s26 = scalar_select %p265_p1, %s3012_s19, %s267_s24  }
   0xb   : > { %p3119_p5 = por %p278_p2, %p277_p0  ;;  %p3123_p6 = por %p284_p4, %p283_p3 }
   0xc   : > { %p2311_p7 = scmp.ge.s32.totalorder %s3016_s20, 1  ;;  %p341_p8 = scmp.lt.s32.totalorder %s3016_s20, 3 }
   0xe   : > { %p342_p9 = pnand %p2311_p7, %p341_p8 }
   0xf   : > { %s2313_s12 = sshll.u32 (!%p342_p9), %s3102_s21, 5  ;;  %s3651_s0 = sld [smem:[#allocation5_spill]] (!%p342_p9) }
  0x10   : > { %345 = sbr.rel (%p342_p9) target bundleno = 1097 (0x449), region = 64  ;;  %p382_p10 = scmp.lt.s32.totalorder (!%p342_p9), %s2313_s12, 63 }
  0x11   : > { %s378_s30 = sand.u32 (!%p342_p9), 1, %s3008_s18   ;;  %s2485_s16 = sshll.u32 (!%p342_p9), %s3102_s21, 12 }
  0x12   : > { %s3587_s29 = scalar_lea.hbm (!%p342_p9), %s3647_s11, %s2485_s16  ;;  %s3596_s21 = scalar_lea.sflag (!%p342_p9), [#allocation3], %s378_s30 }
  0x13   : > { %s3018_s13 = smov (!%p342_p9), [#allocation2]  }
  0x14   : > { %s2960_s14 = sshll.u32 (!%p342_p9), %s3018_s13, 4  ;;  %s2961_s14 = int_to_ptr.vmem [resolvable:$false] %s2960_s14 }
  0x15   : > { %v420_v0 = vld [vmem:[%s3637_s1] sm:$0xff]  ;;  %v783_v1 = vld [vmem:[%s3639_s3 + $0x8] sm:$0xff]  ;;  %s3657_s12 = smov (!%p382_p10, %s2313_s12), 63  ;;  %vm428_vm0 = vcmask 64512   ;;  %v1147_v35 = vld [vmem:[%s3641_s5 + $0x10] sm:$0xff]  ;;  %vm791_vm1 = vcmask 130048  }
  0x16   : > { %2655 = vmatprep.subr.mxu0 %v420_v0  ;;  %2913 = vmatprep.subr.mxu1 %v420_v0  ;;  %s2314_s15 = sshll.u32 %s3657_s12, 3  ;;  %v782_v10 = vld [vmem:[%s3639_s3] sm:$0xff]  ;;  %v1146_v36 = vld [vmem:[%s3641_s5 + $0x8] sm:$0xff]  ;;  %vm1155_vm2 = vcmask 195584   ;;  %s2312_s12 = sshll.u32 %s378_s30, 8 }
  0x17   : > { %2656 = vmatpush3.msra.mxu0 %v420_v0  ;;  %2914 = vmatpush3.msra.mxu1 %v420_v0  ;;  %s3139_s24 = scalar_lea.vmem %s3651_s0, %s2314_s15  ;;  %v1145_v37 = vld [vmem:[%s3641_s5] sm:$0xff]  ;;  %s3520_s15 = scalar_lea.vmem [#allocation2], %s2312_s12 }
  0x18   : > { %2705 = vmatprep.subr.mxu1 %v783_v1  ;;  %v388_v2 = vld [vmem:[%s3139_s24] sm:$0xff]  ;;  %v389_v3 = vld [vmem:[%s3139_s24 + $0x8] sm:$0xff]  ;;  %v390_v4 = vld [vmem:[%s3139_s24 + $0x10] sm:$0xff]  ;;  %2757 = vmatprep.subr.mxu0 %v1147_v35  ;;  %s2246_s22 = sshll.u32 %s3520_s15, 4  ;;  %s2962_s16 = scalar_lea.vmem %s2961_s14, 8192  ;;  %s3589_s22 = int_to_ptr.vmem [resolvable:$true] %s2246_s22 }
  0x19   : > { %2657 = vmatprep.mubr.msk.f32.mxu0 %vm428_vm0, %v388_v2  ;;  %v391_v5 = vld [vmem:[%s3139_s24 + $0x18] sm:$0xff]  ;;  %v392_v6 = vld [vmem:[%s3139_s24 + $0x20] sm:$0xff]  ;;  %v405_v8 = vld [vmem:[%s3139_s24 + $0x88] sm:$0xff]  ;;  %s2956_s12 = scalar_lea.vmem %s3589_s22, 4096  ;;  %p2963_p0 = scmp.lt.s32.totalorder %s3589_s22, %s2961_s14 }
  0x1a   : > { %2658 = vmatmul.mubr.msk.f32.vlgmr.msra.gmra.mxu0 %vm428_vm0, %v389_v3  ;;  %v404_v7 = vld [vmem:[%s3139_s24 + $0x80] sm:$0xff]  ;;  %v406_v9 = vld [vmem:[%s3139_s24 + $0x90] sm:$0xff]  ;;  %v393_v11 = vld [vmem:[%s3139_s24 + $0x28] sm:$0xff]  ;;  %p2957_p11 = scmp.ne.s32.totalorder %s3589_s22, %s2956_s12  ;;  %p2964_p1 = scmp.lt.s32.totalorder %s2962_s16, %s2956_s12 }
  0x1b   : > { %2660 = vmatprep.mubr.msk.f32.mxu0 %vm428_vm0, %v390_v4  ;;  %2681 = vmatprep.mubr.msk.f32.mxu1 %vm428_vm0, %v404_v7  ;;  %v394_v12 = vld [vmem:[%s3139_s24 + $0x30] sm:$0xff]  ;;  %v407_v13 = vld [vmem:[%s3139_s24 + $0x98] sm:$0xff]  ;;  %v408_v14 = vld [vmem:[%s3139_s24 + $0xa0] sm:$0xff] }
  0x1c   : > { %2682 = vmatmul.mubr.msk.f32.vlgmr.msra.gmra.mxu1 %vm428_vm0, %v405_v8  ;;  %v395_v15 = vld [vmem:[%s3139_s24 + $0x38] sm:$0xff]  ;;  %v396_v16 = vld [vmem:[%s3139_s24 + $0x40] sm:$0xff]  ;;  %v409_v17 = vld [vmem:[%s3139_s24 + $0xa8] sm:$0xff]  ;;  %2758 = vmatpush3.msra.mxu0 %v1147_v35  ;;  %p2958_p12 = pnand %p2957_p11, %p3119_p5  ;;  %p2965_p2 = por %p2964_p1, %p2963_p0 }
  0x1d   : > { %2684 = vmatprep.mubr.msk.f32.mxu1 %vm428_vm0, %v406_v9  ;;  %2706 = vmatpush3.msra.mxu1 %v783_v1  ;;  %v410_v18 = vld [vmem:[%s3139_s24 + $0xb0] sm:$0xff]  ;;  %v397_v19 = vld [vmem:[%s3139_s24 + $0x48] sm:$0xff]  ;;  %v411_v21 = vld [vmem:[%s3139_s24 + $0xb8] sm:$0xff] }
  0x1e   : > { %2661 = vmatmul.mubr.msk.f32.gmra.mxu0 %vm428_vm0, %v391_v5  ;;  %2707 = vmatprep.subr.mxu1 %v782_v10  ;;  %v398_v20 = vld [vmem:[%s3139_s24 + $0x50] sm:$0xff]  ;;  %v412_v22 = vld [vmem:[%s3139_s24 + $0xc0] sm:$0xff]  ;;  %v399_v23 = vld [vmem:[%s3139_s24 + $0x58] sm:$0xff]  ;;  %p2959_p13 = pneg %p2958_p12 }
  0x1f   : > { %2663 = vmatprep.mubr.msk.f32.mxu0 %vm428_vm0, %v392_v6  ;;  %2708 = vmatpush3.msra.mxu1 %v782_v10  ;;  %v400_v24 = vld [vmem:[%s3139_s24 + $0x60] sm:$0xff]  ;;  %v413_v25 = vld [vmem:[%s3139_s24 + $0xc8] sm:$0xff]  ;;  %v414_v26 = vld [vmem:[%s3139_s24 + $0xd0] sm:$0xff] }
  0x20   : > { %2685 = vmatmul.mubr.msk.f32.gmra.mxu1 %vm428_vm0, %v407_v13  ;;  %v401_v27 = vld [vmem:[%s3139_s24 + $0x68] sm:$0xff]  ;;  %v402_v28 = vld [vmem:[%s3139_s24 + $0x70] sm:$0xff]  ;;  %v415_v29 = vld [vmem:[%s3139_s24 + $0xd8] sm:$0xff]  ;;  %2759 = vmatprep.subr.mxu0 %v1146_v36  ;;  %p2966_p3 = pnand %p2965_p2, %p2959_p13 }
  0x21   : > { %2687 = vmatprep.mubr.msk.f32.mxu1 %vm428_vm0, %v408_v14  ;;  %v416_v30 = vld [vmem:[%s3139_s24 + $0xe0] sm:$0xff]  ;;  %v403_v31 = vld [vmem:[%s3139_s24 + $0x78] sm:$0xff]  ;;  %v417_v32 = vld [vmem:[%s3139_s24 + $0xe8] sm:$0xff]  ;;  %2760 = vmatpush3.msra.mxu0 %v1146_v36 }
  0x22   : > { %2664 = vmatmul.mubr.msk.f32.gmra.mxu0 %vm428_vm0, %v393_v11  ;;  %v418_v33 = vld [vmem:[%s3139_s24 + $0xf0] sm:$0xff]  ;;  %v419_v34 = vld [vmem:[%s3139_s24 + $0xf8] sm:$0xff]  ;;  %2761 = vmatprep.subr.mxu0 %v1145_v37  ;;  %v3220_v38 = vld [vmem:[%s3638_s2] ss:$0 sm:$0xff] }
  0x23   : > { %2666 = vmatprep.mubr.msk.f32.mxu0 %vm428_vm0, %v394_v12  ;;  %2762 = vmatpush3.msra.mxu0 %v1145_v37 }
  0x24   : > { %2688 = vmatmul.mubr.msk.f32.gmra.mxu1 %vm428_vm0, %v409_v17 }
  0x25   : > { %2690 = vmatprep.mubr.msk.f32.mxu1 %vm428_vm0, %v410_v18 }
  0x26   : > { %2667 = vmatmul.mubr.msk.f32.gmra.mxu0 %vm428_vm0, %v395_v15 }
  0x27   : > { %2669 = vmatprep.mubr.msk.f32.mxu0 %vm428_vm0, %v396_v16 }
  0x28   : > { %2691 = vmatmul.mubr.msk.f32.gmra.mxu1 %vm428_vm0, %v411_v21 }
  0x29   : > { %2693 = vmatprep.mubr.msk.f32.mxu1 %vm428_vm0, %v412_v22 }
  0x2a   : > { %2670 = vmatmul.mubr.msk.f32.gmra.mxu0 %vm428_vm0, %v397_v19 }
  0x2b   : > { %2672 = vmatprep.mubr.msk.f32.mxu0 %vm428_vm0, %v398_v20 }
  0x2c   : > { %2694 = vmatmul.mubr.msk.f32.gmra.mxu1 %vm428_vm0, %v413_v25 }
  0x2d   : > { %2696 = vmatprep.mubr.msk.f32.mxu1 %vm428_vm0, %v414_v26 }
  0x2e   : > { %2673 = vmatmul.mubr.msk.f32.gmra.mxu0 %vm428_vm0, %v399_v23 }
  0x2f   : > { %2675 = vmatprep.mubr.msk.f32.mxu0 %vm428_vm0, %v400_v24 }
  0x30   : > { %2697 = vmatmul.mubr.msk.f32.gmra.mxu1 %vm428_vm0, %v415_v29 }
  0x31   : > { %2699 = vmatprep.mubr.msk.f32.mxu1 %vm428_vm0, %v416_v30 }
  0x32   : > { %2676 = vmatmul.mubr.msk.f32.gmra.mxu0 %vm428_vm0, %v401_v27 }
  0x33   : > { %2678 = vmatprep.mubr.msk.f32.mxu0 %vm428_vm0, %v402_v28 }
  0x34   : > { %2700 = vmatmul.mubr.msk.f32.gmra.mxu1 %vm428_vm0, %v417_v32 }
  0x35   : > { %2702 = vmatprep.mubr.msk.f32.mxu1 %vm428_vm0, %v418_v33 }
  0x36   : > { %2679 = vmatmul.mubr.msk.f32.gmra.mxu0 %vm428_vm0, %v403_v31 }
  0x38   : > { %2703 = vmatmul.mubr.msk.f32.gmra.mxu1 %vm428_vm0, %v419_v34 }
  0xda   : > { %v2659_v39 = vpop.f32.mrf.mxu0 }
  0xdb   : > { %v597_v40 = vadd.f32 %v2659_v39, %v3220_v38 }
  0xdc   : > { %v591_v41 = vpop.f32.mrf.mxu0  ;;  %v3224_v45 = vpop.f32.mrf.mxu1 }
  0xdd   : > { %v592_v42 = vadd.f32 %v3220_v38, %v591_v41  ;;  %v751_v46 = vmax.f32 %v597_v40, 0.0  ;;  %v677_v36 = vadd.f32 %v3224_v45, %v3220_v38 }
  0xde   : > { %v2662_v43 = vpop.f32.mrf.mxu0  ;;  %v671_v50 = vpop.f32.mrf.mxu1 }
  0xdf   : > { %v750_v44 = vmax.f32 %v592_v42, 0.0  ;;  %v607_v47 = vadd.f32 %v2662_v43, %v3220_v38  ;;  %v672_v26 = vadd.f32 %v3220_v38, %v671_v50  ;;  %v767_v41 = vmax.f32 %v677_v36, 0.0 }
  0xe0   : > { %v601_v48 = vpop.f32.mrf.mxu0  ;;  %v3230_v53 = vpop.f32.mrf.mxu1 }
  0xe1   : > { %v602_v49 = vadd.f32 %v3220_v38, %v601_v48  ;;  %2709 = vmatprep.mubr.msk.f32.mxu1 %vm791_vm1, %v750_v44  ;;  %v753_v54 = vmax.f32 %v607_v47, 0.0  ;;  %v766_v33 = vmax.f32 %v672_v26, 0.0  ;;  %v687_v42 = vadd.f32 %v3230_v53, %v3220_v38 }
  0xe2   : > { %v2665_v51 = vpop.f32.mrf.mxu0  ;;  %2710 = vmatmul.mubr.msk.f32.vlgmr.msra.gmra.mxu1 %vm791_vm1, %v751_v46  ;;  %v681_v58 = vpop.f32.mrf.mxu1 }
  0xe3   : > { %v752_v52 = vmax.f32 %v602_v49, 0.0  ;;  %v617_v55 = vadd.f32 %v2665_v51, %v3220_v38  ;;  %v682_v34 = vadd.f32 %v3220_v38, %v681_v58  ;;  %v769_v46 = vmax.f32 %v687_v42, 0.0 }
  0xe4   : > { %v611_v56 = vpop.f32.mrf.mxu0  ;;  %v3236_v61 = vpop.f32.mrf.mxu1 }
  0xe5   : > { %v612_v57 = vadd.f32 %v3220_v38, %v611_v56  ;;  %2712 = vmatprep.mubr.msk.f32.mxu1 %vm791_vm1, %v752_v52  ;;  %v755_v62 = vmax.f32 %v617_v55, 0.0  ;;  %v768_v39 = vmax.f32 %v682_v34, 0.0  ;;  %v697_v47 = vadd.f32 %v3236_v61, %v3220_v38 }
  0xe6   : > { %v2668_v59 = vpop.f32.mrf.mxu0  ;;  %2713 = vmatmul.mubr.msk.f32.gmra.mxu1 %vm791_vm1, %v753_v54  ;;  %v691_v2 = vpop.f32.mrf.mxu1 }
  0xe7   : > { %v754_v60 = vmax.f32 %v612_v57, 0.0  ;;  %v627_v63 = vadd.f32 %v2668_v59, %v3220_v38  ;;  %v692_v40 = vadd.f32 %v3220_v38, %v691_v2  ;;  %v771_v51 = vmax.f32 %v697_v47, 0.0 }
  0xe8   : > { %v621_v0 = vpop.f32.mrf.mxu0  ;;  %v2692_v8 = vpop.f32.mrf.mxu1 }
  0xe9   : > { %v622_v1 = vadd.f32 %v3220_v38, %v621_v0  ;;  %2715 = vmatprep.mubr.msk.f32.mxu1 %vm791_vm1, %v754_v60  ;;  %v757_v5 = vmax.f32 %v627_v63, 0.0  ;;  %v770_v44 = vmax.f32 %v692_v40, 0.0  ;;  %v707_v52 = vadd.f32 %v2692_v8, %v3220_v38  ;;  %v1510_v8 = vld [vmem:[%s3643_s7 + $0x8] sm:$0xff] }
  0xea   : > { %v2671_v3 = vpop.f32.mrf.mxu0  ;;  %2716 = vmatmul.mubr.msk.f32.gmra.mxu1 %vm791_vm1, %v755_v62  ;;  %v701_v15 = vpop.f32.mrf.mxu1  ;;  %2811 = vmatprep.subr.mxu1 %v1510_v8 }
  0xeb   : > { %v756_v4 = vmax.f32 %v622_v1, 0.0  ;;  %v637_v6 = vadd.f32 %v2671_v3, %v3220_v38  ;;  %v702_v45 = vadd.f32 %v3220_v38, %v701_v15  ;;  %v773_v56 = vmax.f32 %v707_v52, 0.0  ;;  %2812 = vmatpush3.msra.mxu1 %v1510_v8 }
  0xec   : > { %v631_v7 = vpop.f32.mrf.mxu0  ;;  %v2695_v22 = vpop.f32.mrf.mxu1 }
  0xed   : > { %v632_v9 = vadd.f32 %v3220_v38, %v631_v7  ;;  %2718 = vmatprep.mubr.msk.f32.mxu1 %vm791_vm1, %v756_v4  ;;  %v759_v12 = vmax.f32 %v637_v6, 0.0  ;;  %v772_v49 = vmax.f32 %v702_v45, 0.0  ;;  %v717_v57 = vadd.f32 %v2695_v22, %v3220_v38 }
  0xee   : > { %v2674_v10 = vpop.f32.mrf.mxu0  ;;  %2719 = vmatmul.mubr.msk.f32.gmra.mxu1 %vm791_vm1, %v757_v5  ;;  %v711_v30 = vpop.f32.mrf.mxu1 }
  0xef   : > { %v758_v11 = vmax.f32 %v632_v9, 0.0  ;;  %v647_v13 = vadd.f32 %v2674_v10, %v3220_v38  ;;  %v712_v50 = vadd.f32 %v3220_v38, %v711_v30  ;;  %v775_v61 = vmax.f32 %v717_v57, 0.0  ;;  %v1509_v9 = vld [vmem:[%s3643_s7] sm:$0xff] }
  0xf0   : > { %v641_v14 = vpop.f32.mrf.mxu0  ;;  %v2698_v37 = vpop.f32.mrf.mxu1  ;;  %2813 = vmatprep.subr.mxu1 %v1509_v9 }
  0xf1   : > { %v642_v16 = vadd.f32 %v3220_v38, %v641_v14  ;;  %2721 = vmatprep.mubr.msk.f32.mxu1 %vm791_vm1, %v758_v11  ;;  %v761_v19 = vmax.f32 %v647_v13, 0.0  ;;  %v774_v54 = vmax.f32 %v712_v50, 0.0  ;;  %v727_v62 = vadd.f32 %v2698_v37, %v3220_v38  ;;  %2814 = vmatpush3.msra.mxu1 %v1509_v9 }
  0xf2   : > { %v2677_v17 = vpop.f32.mrf.mxu0  ;;  %2722 = vmatmul.mubr.msk.f32.gmra.mxu1 %vm791_vm1, %v759_v12  ;;  %v721_v43 = vpop.f32.mrf.mxu1 }
  0xf3   : > { %v760_v18 = vmax.f32 %v642_v16, 0.0  ;;  %v657_v20 = vadd.f32 %v2677_v17, %v3220_v38  ;;  %v722_v55 = vadd.f32 %v3220_v38, %v721_v43  ;;  %v777_v2 = vmax.f32 %v727_v62, 0.0 }
  0xf4   : > { %v651_v21 = vpop.f32.mrf.mxu0  ;;  %v2701_v48 = vpop.f32.mrf.mxu1 }
  0xf5   : > { %v652_v23 = vadd.f32 %v3220_v38, %v651_v21  ;;  %2724 = vmatprep.mubr.msk.f32.mxu1 %vm791_vm1, %v760_v18  ;;  %v763_v27 = vmax.f32 %v657_v20, 0.0  ;;  %v776_v59 = vmax.f32 %v722_v55, 0.0  ;;  %v737_v3 = vadd.f32 %v2701_v48, %v3220_v38 }
  0xf6   : > { %v2680_v24 = vpop.f32.mrf.mxu0  ;;  %2725 = vmatmul.mubr.msk.f32.gmra.mxu1 %vm791_vm1, %v761_v19  ;;  %v731_v53 = vpop.f32.mrf.mxu1 }
  0xf7   : > { %v762_v25 = vmax.f32 %v652_v23, 0.0  ;;  %v667_v28 = vadd.f32 %v2680_v24, %v3220_v38  ;;  %v732_v60 = vadd.f32 %v3220_v38, %v731_v53  ;;  %v779_v5 = vmax.f32 %v737_v3, 0.0 }
  0xf8   : > { %v661_v29 = vpop.f32.mrf.mxu0  ;;  %v2704_v58 = vpop.f32.mrf.mxu1 }
  0xf9   : > { %v662_v31 = vadd.f32 %v3220_v38, %v661_v29  ;;  %2727 = vmatprep.mubr.msk.f32.mxu1 %vm791_vm1, %v762_v25  ;;  %v765_v35 = vmax.f32 %v667_v28, 0.0  ;;  %v778_v0 = vmax.f32 %v732_v60, 0.0  ;;  %v747_v6 = vadd.f32 %v2704_v58, %v3220_v38 }
  0xfa   : > { %2728 = vmatmul.mubr.msk.f32.gmra.mxu1 %vm791_vm1, %v763_v27  ;;  %v741_v63 = vpop.f32.mrf.mxu1 }
  0xfb   : > { %v764_v32 = vmax.f32 %v662_v31, 0.0  ;;  %v742_v1 = vadd.f32 %v3220_v38, %v741_v63  ;;  %v781_v7 = vmax.f32 %v747_v6, 0.0  ;;  %v3304_v38 = vld [vmem:[%s3640_s4] ss:$0 sm:$0xff] }
  0xfd   : > { %2730 = vmatprep.mubr.msk.f32.mxu1 %vm791_vm1, %v764_v32  ;;  %v780_v4 = vmax.f32 %v742_v1, 0.0 }
  0xfe   : > { %2731 = vmatmul.mubr.msk.f32.gmra.mxu1 %vm791_vm1, %v765_v35 }
  0xff   : > { %2733 = vmatprep.mubr.msk.f32.mxu1 %vm791_vm1, %v766_v33 }
 0x102   : > { %2734 = vmatmul.mubr.msk.f32.gmra.mxu1 %vm791_vm1, %v767_v41 }
 0x103   : > { %2736 = vmatprep.mubr.msk.f32.mxu1 %vm791_vm1, %v768_v39 }
 0x106   : > { %2737 = vmatmul.mubr.msk.f32.gmra.mxu1 %vm791_vm1, %v769_v46 }
 0x107   : > { %2739 = vmatprep.mubr.msk.f32.mxu1 %vm791_vm1, %v770_v44 }
 0x10a   : > { %2740 = vmatmul.mubr.msk.f32.gmra.mxu1 %vm791_vm1, %v771_v51 }
 0x10b   : > { %2742 = vmatprep.mubr.msk.f32.mxu1 %vm791_vm1, %v772_v49 }
 0x10e   : > { %2743 = vmatmul.mubr.msk.f32.gmra.mxu1 %vm791_vm1, %v773_v56 }
 0x10f   : > { %2745 = vmatprep.mubr.msk.f32.mxu1 %vm791_vm1, %v774_v54 }
 0x112   : > { %2746 = vmatmul.mubr.msk.f32.gmra.mxu1 %vm791_vm1, %v775_v61 }
 0x113   : > { %2748 = vmatprep.mubr.msk.f32.mxu1 %vm791_vm1, %v776_v59 }
 0x116   : > { %2749 = vmatmul.mubr.msk.f32.gmra.mxu1 %vm791_vm1, %v777_v2 }
 0x117   : > { %2751 = vmatprep.mubr.msk.f32.mxu1 %vm791_vm1, %v778_v0 }
 0x11a   : > { %2752 = vmatmul.mubr.msk.f32.gmra.mxu1 %vm791_vm1, %v779_v5 }
 0x11b   : > { %2754 = vmatprep.mubr.msk.f32.mxu1 %vm791_vm1, %v780_v4 }
 0x11e   : > { %2755 = vmatmul.mubr.msk.f32.gmra.mxu1 %vm791_vm1, %v781_v7 }
 0x1a2   : > { %v2711_v10 = vpop.f32.mrf.mxu1 }
 0x1a3   : > { %v960_v11 = vadd.f32 %v2711_v10, %v3304_v38 }
 0x1a4   : > { %v954_v12 = vpop.f32.mrf.mxu1 }
 0x1a5   : > { %v955_v13 = vadd.f32 %v3304_v38, %v954_v12  ;;  %v1114_v16 = vmax.f32 %v960_v11, 0.0 }
 0x1a6   : > { %v2714_v14 = vpop.f32.mrf.mxu1 }
 0x1a7   : > { %v1113_v15 = vmax.f32 %v955_v13, 0.0  ;;  %v970_v17 = vadd.f32 %v2714_v14, %v3304_v38 }
 0x1a8   : > { %v964_v18 = vpop.f32.mrf.mxu1 }
 0x1a9   : > { %v965_v19 = vadd.f32 %v3304_v38, %v964_v18  ;;  %2763 = vmatprep.mubr.msk.f32.mxu0 %vm1155_vm2, %v1113_v15  ;;  %v1116_v22 = vmax.f32 %v970_v17, 0.0 }
 0x1aa   : > { %v2717_v20 = vpop.f32.mrf.mxu1  ;;  %2764 = vmatmul.mubr.msk.f32.vlgmr.msra.gmra.mxu0 %vm1155_vm2, %v1114_v16 }
 0x1ab   : > { %v1115_v21 = vmax.f32 %v965_v19, 0.0  ;;  %v980_v23 = vadd.f32 %v2717_v20, %v3304_v38 }
 0x1ac   : > { %v974_v24 = vpop.f32.mrf.mxu1 }
 0x1ad   : > { %v975_v25 = vadd.f32 %v3304_v38, %v974_v24  ;;  %2766 = vmatprep.mubr.msk.f32.mxu0 %vm1155_vm2, %v1115_v21  ;;  %v1118_v28 = vmax.f32 %v980_v23, 0.0 }
 0x1ae   : > { %v2720_v26 = vpop.f32.mrf.mxu1  ;;  %2767 = vmatmul.mubr.msk.f32.gmra.mxu0 %vm1155_vm2, %v1116_v22 }
 0x1af   : > { %v1117_v27 = vmax.f32 %v975_v25, 0.0  ;;  %v990_v29 = vadd.f32 %v2720_v26, %v3304_v38 }
 0x1b0   : > { %v984_v30 = vpop.f32.mrf.mxu1 }
 0x1b1   : > { %v985_v31 = vadd.f32 %v3304_v38, %v984_v30  ;;  %2769 = vmatprep.mubr.msk.f32.mxu0 %vm1155_vm2, %v1117_v27  ;;  %v1120_v34 = vmax.f32 %v990_v29, 0.0 }
 0x1b2   : > { %v2723_v32 = vpop.f32.mrf.mxu1  ;;  %2770 = vmatmul.mubr.msk.f32.gmra.mxu0 %vm1155_vm2, %v1118_v28 }
 0x1b3   : > { %v1119_v33 = vmax.f32 %v985_v31, 0.0  ;;  %v1000_v35 = vadd.f32 %v2723_v32, %v3304_v38 }
 0x1b4   : > { %v994_v36 = vpop.f32.mrf.mxu1 }
 0x1b5   : > { %v995_v37 = vadd.f32 %v3304_v38, %v994_v36  ;;  %2772 = vmatprep.mubr.msk.f32.mxu0 %vm1155_vm2, %v1119_v33  ;;  %v1122_v41 = vmax.f32 %v1000_v35, 0.0 }
 0x1b6   : > { %v2726_v39 = vpop.f32.mrf.mxu1  ;;  %2773 = vmatmul.mubr.msk.f32.gmra.mxu0 %vm1155_vm2, %v1120_v34 }
 0x1b7   : > { %v1121_v40 = vmax.f32 %v995_v37, 0.0  ;;  %v1010_v42 = vadd.f32 %v2726_v39, %v3304_v38 }
 0x1b8   : > { %v1004_v43 = vpop.f32.mrf.mxu1 }
 0x1b9   : > { %v1005_v44 = vadd.f32 %v3304_v38, %v1004_v43  ;;  %2775 = vmatprep.mubr.msk.f32.mxu0 %vm1155_vm2, %v1121_v40  ;;  %v1124_v47 = vmax.f32 %v1010_v42, 0.0 }
 0x1ba   : > { %v2729_v45 = vpop.f32.mrf.mxu1  ;;  %2776 = vmatmul.mubr.msk.f32.gmra.mxu0 %vm1155_vm2, %v1122_v41 }
 0x1bb   : > { %v1123_v46 = vmax.f32 %v1005_v44, 0.0  ;;  %v1020_v48 = vadd.f32 %v2729_v45, %v3304_v38  ;;  %v1871_v44 = vld [vmem:[%s3645_s9] sm:$0xff] }
 0x1bc   : > { %v1014_v49 = vpop.f32.mrf.mxu1  ;;  %2863 = vmatprep.subr.mxu0 %v1871_v44 }
 0x1bd   : > { %v1015_v50 = vadd.f32 %v3304_v38, %v1014_v49  ;;  %2778 = vmatprep.mubr.msk.f32.mxu0 %vm1155_vm2, %v1123_v46  ;;  %v1126_v53 = vmax.f32 %v1020_v48, 0.0  ;;  %2864 = vmatpush3.msra.mxu0 %v1871_v44 }
 0x1be   : > { %v2732_v51 = vpop.f32.mrf.mxu1  ;;  %2779 = vmatmul.mubr.msk.f32.gmra.mxu0 %vm1155_vm2, %v1124_v47 }
 0x1bf   : > { %v1125_v52 = vmax.f32 %v1015_v50, 0.0  ;;  %v1030_v54 = vadd.f32 %v2732_v51, %v3304_v38 }
 0x1c0   : > { %v1024_v55 = vpop.f32.mrf.mxu1 }
 0x1c1   : > { %v1025_v56 = vadd.f32 %v3304_v38, %v1024_v55  ;;  %2781 = vmatprep.mubr.msk.f32.mxu0 %vm1155_vm2, %v1125_v52  ;;  %v1128_v59 = vmax.f32 %v1030_v54, 0.0 }
 0x1c2   : > { %v2735_v57 = vpop.f32.mrf.mxu1  ;;  %2782 = vmatmul.mubr.msk.f32.gmra.mxu0 %vm1155_vm2, %v1126_v53 }
 0x1c3   : > { %v1127_v58 = vmax.f32 %v1025_v56, 0.0  ;;  %v1040_v60 = vadd.f32 %v2735_v57, %v3304_v38 }
 0x1c4   : > { %v1034_v61 = vpop.f32.mrf.mxu1 }
 0x1c5   : > { %v1035_v62 = vadd.f32 %v3304_v38, %v1034_v61  ;;  %2784 = vmatprep.mubr.msk.f32.mxu0 %vm1155_vm2, %v1127_v58  ;;  %v1130_v1 = vmax.f32 %v1040_v60, 0.0 }
 0x1c6   : > { %v2738_v63 = vpop.f32.mrf.mxu1  ;;  %2785 = vmatmul.mubr.msk.f32.gmra.mxu0 %vm1155_vm2, %v1128_v59 }
 0x1c7   : > { %v1129_v0 = vmax.f32 %v1035_v62, 0.0  ;;  %v1050_v2 = vadd.f32 %v2738_v63, %v3304_v38 }
 0x1c8   : > { %v1044_v3 = vpop.f32.mrf.mxu1 }
 0x1c9   : > { %v1045_v4 = vadd.f32 %v3304_v38, %v1044_v3  ;;  %2787 = vmatprep.mubr.msk.f32.mxu0 %vm1155_vm2, %v1129_v0  ;;  %v1132_v7 = vmax.f32 %v1050_v2, 0.0 }
 0x1ca   : > { %v2741_v5 = vpop.f32.mrf.mxu1  ;;  %2788 = vmatmul.mubr.msk.f32.gmra.mxu0 %vm1155_vm2, %v1130_v1 }
 0x1cb   : > { %v1131_v6 = vmax.f32 %v1045_v4, 0.0  ;;  %v1060_v8 = vadd.f32 %v2741_v5, %v3304_v38 }
 0x1cc   : > { %v1054_v9 = vpop.f32.mrf.mxu1 }
 0x1cd   : > { %v1055_v10 = vadd.f32 %v3304_v38, %v1054_v9  ;;  %2790 = vmatprep.mubr.msk.f32.mxu0 %vm1155_vm2, %v1131_v6  ;;  %v1134_v13 = vmax.f32 %v1060_v8, 0.0 }
 0x1ce   : > { %v2744_v11 = vpop.f32.mrf.mxu1  ;;  %2791 = vmatmul.mubr.msk.f32.gmra.mxu0 %vm1155_vm2, %v1132_v7 }
 0x1cf   : > { %v1133_v12 = vmax.f32 %v1055_v10, 0.0  ;;  %v1070_v14 = vadd.f32 %v2744_v11, %v3304_v38 }
 0x1d0   : > { %v1064_v15 = vpop.f32.mrf.mxu1 }
 0x1d1   : > { %v1065_v16 = vadd.f32 %v3304_v38, %v1064_v15  ;;  %2793 = vmatprep.mubr.msk.f32.mxu0 %vm1155_vm2, %v1133_v12  ;;  %v1136_v19 = vmax.f32 %v1070_v14, 0.0 }
 0x1d2   : > { %v2747_v17 = vpop.f32.mrf.mxu1  ;;  %2794 = vmatmul.mubr.msk.f32.gmra.mxu0 %vm1155_vm2, %v1134_v13 }
 0x1d3   : > { %v1135_v18 = vmax.f32 %v1065_v16, 0.0  ;;  %v1080_v20 = vadd.f32 %v2747_v17, %v3304_v38 }
 0x1d4   : > { %v1074_v21 = vpop.f32.mrf.mxu1 }
 0x1d5   : > { %v1075_v22 = vadd.f32 %v3304_v38, %v1074_v21  ;;  %2796 = vmatprep.mubr.msk.f32.mxu0 %vm1155_vm2, %v1135_v18  ;;  %v1138_v25 = vmax.f32 %v1080_v20, 0.0 }
 0x1d6   : > { %v2750_v23 = vpop.f32.mrf.mxu1  ;;  %2797 = vmatmul.mubr.msk.f32.gmra.mxu0 %vm1155_vm2, %v1136_v19 }
 0x1d7   : > { %v1137_v24 = vmax.f32 %v1075_v22, 0.0  ;;  %v1090_v26 = vadd.f32 %v2750_v23, %v3304_v38 }
 0x1d8   : > { %v1084_v27 = vpop.f32.mrf.mxu1 }
 0x1d9   : > { %v1085_v28 = vadd.f32 %v3304_v38, %v1084_v27  ;;  %2799 = vmatprep.mubr.msk.f32.mxu0 %vm1155_vm2, %v1137_v24  ;;  %v1140_v31 = vmax.f32 %v1090_v26, 0.0 }
 0x1da   : > { %v2753_v29 = vpop.f32.mrf.mxu1  ;;  %2800 = vmatmul.mubr.msk.f32.gmra.mxu0 %vm1155_vm2, %v1138_v25 }
 0x1db   : > { %v1139_v30 = vmax.f32 %v1085_v28, 0.0  ;;  %v1100_v32 = vadd.f32 %v2753_v29, %v3304_v38 }
 0x1dc   : > { %v1094_v33 = vpop.f32.mrf.mxu1 }
 0x1dd   : > { %v1095_v34 = vadd.f32 %v3304_v38, %v1094_v33  ;;  %2802 = vmatprep.mubr.msk.f32.mxu0 %vm1155_vm2, %v1139_v30  ;;  %v1142_v37 = vmax.f32 %v1100_v32, 0.0 }
 0x1de   : > { %v2756_v35 = vpop.f32.mrf.mxu1  ;;  %2803 = vmatmul.mubr.msk.f32.gmra.mxu0 %vm1155_vm2, %v1140_v31 }
 0x1df   : > { %v1141_v36 = vmax.f32 %v1095_v34, 0.0  ;;  %v1110_v39 = vadd.f32 %v2756_v35, %v3304_v38 }
 0x1e0   : > { %v1104_v40 = vpop.f32.mrf.mxu1 }
 0x1e1   : > { %v1105_v41 = vadd.f32 %v3304_v38, %v1104_v40  ;;  %2805 = vmatprep.mubr.msk.f32.mxu0 %vm1155_vm2, %v1141_v36  ;;  %v1144_v43 = vmax.f32 %v1110_v39, 0.0  ;;  %v3376_v38 = vld [vmem:[%s3642_s6] ss:$0 sm:$0xff] }
 0x1e2   : > { %2806 = vmatmul.mubr.msk.f32.gmra.mxu0 %vm1155_vm2, %v1142_v37 }
 0x1e3   : > { %v1143_v42 = vmax.f32 %v1105_v41, 0.0 }
 0x1e5   : > { %2808 = vmatprep.mubr.msk.f32.mxu0 %vm1155_vm2, %v1143_v42 }
 0x1e6   : > { %2809 = vmatmul.mubr.msk.f32.gmra.mxu0 %vm1155_vm2, %v1144_v43 }
 0x26a   : > { %v2765_v45 = vpop.f32.mrf.mxu0 }
 0x26b   : > { %v1324_v46 = vadd.f32 %v2765_v45, %v3376_v38 }
 0x26c   : > { %v1318_v47 = vpop.f32.mrf.mxu0 }
 0x26d   : > { %v1319_v48 = vadd.f32 %v3376_v38, %v1318_v47  ;;  %v1478_v51 = vmax.f32 %v1324_v46, 0.0 }
 0x26e   : > { %v2768_v49 = vpop.f32.mrf.mxu0 }
 0x26f   : > { %v1477_v50 = vmax.f32 %v1319_v48, 0.0  ;;  %v1334_v52 = vadd.f32 %v2768_v49, %v3376_v38 }
 0x270   : > { %v1328_v53 = vpop.f32.mrf.mxu0 }
 0x271   : > { %v1329_v54 = vadd.f32 %v3376_v38, %v1328_v53  ;;  %2815 = vmatprep.mubr.msk.f32.mxu1 %vm791_vm1, %v1477_v50  ;;  %v1480_v57 = vmax.f32 %v1334_v52, 0.0 }
 0x272   : > { %v2771_v55 = vpop.f32.mrf.mxu0  ;;  %2816 = vmatmul.mubr.msk.f32.vlgmr.msra.gmra.mxu1 %vm791_vm1, %v1478_v51 }
 0x273   : > { %v1479_v56 = vmax.f32 %v1329_v54, 0.0  ;;  %v1344_v58 = vadd.f32 %v2771_v55, %v3376_v38 }
 0x274   : > { %v1338_v59 = vpop.f32.mrf.mxu0 }
 0x275   : > { %v1339_v60 = vadd.f32 %v3376_v38, %v1338_v59  ;;  %2818 = vmatprep.mubr.msk.f32.mxu1 %vm791_vm1, %v1479_v56  ;;  %v1482_v63 = vmax.f32 %v1344_v58, 0.0 }
 0x276   : > { %v2774_v61 = vpop.f32.mrf.mxu0  ;;  %2819 = vmatmul.mubr.msk.f32.gmra.mxu1 %vm791_vm1, %v1480_v57 }
 0x277   : > { %v1481_v62 = vmax.f32 %v1339_v60, 0.0  ;;  %v1354_v0 = vadd.f32 %v2774_v61, %v3376_v38 }
 0x278   : > { %v1348_v1 = vpop.f32.mrf.mxu0 }
 0x279   : > { %v1349_v2 = vadd.f32 %v3376_v38, %v1348_v1  ;;  %2821 = vmatprep.mubr.msk.f32.mxu1 %vm791_vm1, %v1481_v62  ;;  %v1484_v5 = vmax.f32 %v1354_v0, 0.0 }
 0x27a   : > { %v2777_v3 = vpop.f32.mrf.mxu0  ;;  %2822 = vmatmul.mubr.msk.f32.gmra.mxu1 %vm791_vm1, %v1482_v63 }
 0x27b   : > { %v1483_v4 = vmax.f32 %v1349_v2, 0.0  ;;  %v1364_v6 = vadd.f32 %v2777_v3, %v3376_v38 }
 0x27c   : > { %v1358_v7 = vpop.f32.mrf.mxu0 }
 0x27d   : > { %v1359_v8 = vadd.f32 %v3376_v38, %v1358_v7  ;;  %2824 = vmatprep.mubr.msk.f32.mxu1 %vm791_vm1, %v1483_v4  ;;  %v1486_v11 = vmax.f32 %v1364_v6, 0.0 }
 0x27e   : > { %v2780_v9 = vpop.f32.mrf.mxu0  ;;  %2825 = vmatmul.mubr.msk.f32.gmra.mxu1 %vm791_vm1, %v1484_v5 }
 0x27f   : > { %v1485_v10 = vmax.f32 %v1359_v8, 0.0  ;;  %v1374_v12 = vadd.f32 %v2780_v9, %v3376_v38 }
 0x280   : > { %v1368_v13 = vpop.f32.mrf.mxu0 }
 0x281   : > { %v1369_v14 = vadd.f32 %v3376_v38, %v1368_v13  ;;  %2827 = vmatprep.mubr.msk.f32.mxu1 %vm791_vm1, %v1485_v10  ;;  %v1488_v17 = vmax.f32 %v1374_v12, 0.0 }
 0x282   : > { %v2783_v15 = vpop.f32.mrf.mxu0  ;;  %2828 = vmatmul.mubr.msk.f32.gmra.mxu1 %vm791_vm1, %v1486_v11 }
 0x283   : > { %v1487_v16 = vmax.f32 %v1369_v14, 0.0  ;;  %v1384_v18 = vadd.f32 %v2783_v15, %v3376_v38  ;;  %v3445_v14 = vld [vmem:[%s3644_s8] ss:$0 sm:$0xff] }
 0x284   : > { %v1378_v19 = vpop.f32.mrf.mxu0 }
 0x285   : > { %v1379_v20 = vadd.f32 %v3376_v38, %v1378_v19  ;;  %2830 = vmatprep.mubr.msk.f32.mxu1 %vm791_vm1, %v1487_v16  ;;  %v1490_v23 = vmax.f32 %v1384_v18, 0.0 }
 0x286   : > { %v2786_v21 = vpop.f32.mrf.mxu0  ;;  %2831 = vmatmul.mubr.msk.f32.gmra.mxu1 %vm791_vm1, %v1488_v17 }
 0x287   : > { %v1489_v22 = vmax.f32 %v1379_v20, 0.0  ;;  %v1394_v24 = vadd.f32 %v2786_v21, %v3376_v38 }
 0x288   : > { %v1388_v25 = vpop.f32.mrf.mxu0 }
 0x289   : > { %v1389_v26 = vadd.f32 %v3376_v38, %v1388_v25  ;;  %2833 = vmatprep.mubr.msk.f32.mxu1 %vm791_vm1, %v1489_v22  ;;  %v1492_v29 = vmax.f32 %v1394_v24, 0.0 }
 0x28a   : > { %v2789_v27 = vpop.f32.mrf.mxu0  ;;  %2834 = vmatmul.mubr.msk.f32.gmra.mxu1 %vm791_vm1, %v1490_v23 }
 0x28b   : > { %v1491_v28 = vmax.f32 %v1389_v26, 0.0  ;;  %v1404_v30 = vadd.f32 %v2789_v27, %v3376_v38 }
 0x28c   : > { %v1398_v31 = vpop.f32.mrf.mxu0 }
 0x28d   : > { %v1399_v32 = vadd.f32 %v3376_v38, %v1398_v31  ;;  %2836 = vmatprep.mubr.msk.f32.mxu1 %vm791_vm1, %v1491_v28  ;;  %v1494_v35 = vmax.f32 %v1404_v30, 0.0 }
 0x28e   : > { %v2792_v33 = vpop.f32.mrf.mxu0  ;;  %2837 = vmatmul.mubr.msk.f32.gmra.mxu1 %vm791_vm1, %v1492_v29 }
 0x28f   : > { %v1493_v34 = vmax.f32 %v1399_v32, 0.0  ;;  %v1414_v36 = vadd.f32 %v2792_v33, %v3376_v38 }
 0x290   : > { %v1408_v37 = vpop.f32.mrf.mxu0 }
 0x291   : > { %v1409_v39 = vadd.f32 %v3376_v38, %v1408_v37  ;;  %2839 = vmatprep.mubr.msk.f32.mxu1 %vm791_vm1, %v1493_v34  ;;  %v1496_v42 = vmax.f32 %v1414_v36, 0.0 }
 0x292   : > { %v2795_v40 = vpop.f32.mrf.mxu0  ;;  %2840 = vmatmul.mubr.msk.f32.gmra.mxu1 %vm791_vm1, %v1494_v35 }
 0x293   : > { %v1495_v41 = vmax.f32 %v1409_v39, 0.0  ;;  %v1424_v43 = vadd.f32 %v2795_v40, %v3376_v38 }
 0x294   : > { %v1418_v44 = vpop.f32.mrf.mxu0 }
 0x295   : > { %v1419_v45 = vadd.f32 %v3376_v38, %v1418_v44  ;;  %2842 = vmatprep.mubr.msk.f32.mxu1 %vm791_vm1, %v1495_v41  ;;  %v1498_v48 = vmax.f32 %v1424_v43, 0.0 }
 0x296   : > { %v2798_v46 = vpop.f32.mrf.mxu0  ;;  %2843 = vmatmul.mubr.msk.f32.gmra.mxu1 %vm791_vm1, %v1496_v42 }
 0x297   : > { %v1497_v47 = vmax.f32 %v1419_v45, 0.0  ;;  %v1434_v49 = vadd.f32 %v2798_v46, %v3376_v38 }
 0x298   : > { %v1428_v50 = vpop.f32.mrf.mxu0 }
 0x299   : > { %v1429_v51 = vadd.f32 %v3376_v38, %v1428_v50  ;;  %2845 = vmatprep.mubr.msk.f32.mxu1 %vm791_vm1, %v1497_v47  ;;  %v1500_v54 = vmax.f32 %v1434_v49, 0.0 }
 0x29a   : > { %v2801_v52 = vpop.f32.mrf.mxu0  ;;  %2846 = vmatmul.mubr.msk.f32.gmra.mxu1 %vm791_vm1, %v1498_v48 }
 0x29b   : > { %v1499_v53 = vmax.f32 %v1429_v51, 0.0  ;;  %v1444_v55 = vadd.f32 %v2801_v52, %v3376_v38 }
 0x29c   : > { %v1438_v56 = vpop.f32.mrf.mxu0 }
 0x29d   : > { %v1439_v57 = vadd.f32 %v3376_v38, %v1438_v56  ;;  %2848 = vmatprep.mubr.msk.f32.mxu1 %vm791_vm1, %v1499_v53  ;;  %v1502_v60 = vmax.f32 %v1444_v55, 0.0 }
 0x29e   : > { %v2804_v58 = vpop.f32.mrf.mxu0  ;;  %2849 = vmatmul.mubr.msk.f32.gmra.mxu1 %vm791_vm1, %v1500_v54 }
 0x29f   : > { %v1501_v59 = vmax.f32 %v1439_v57, 0.0  ;;  %v1454_v61 = vadd.f32 %v2804_v58, %v3376_v38 }
 0x2a0   : > { %v1448_v62 = vpop.f32.mrf.mxu0 }
 0x2a1   : > { %v1449_v63 = vadd.f32 %v3376_v38, %v1448_v62  ;;  %2851 = vmatprep.mubr.msk.f32.mxu1 %vm791_vm1, %v1501_v59  ;;  %v1504_v2 = vmax.f32 %v1454_v61, 0.0 }
 0x2a2   : > { %v2807_v0 = vpop.f32.mrf.mxu0  ;;  %2852 = vmatmul.mubr.msk.f32.gmra.mxu1 %vm791_vm1, %v1502_v60 }
 0x2a3   : > { %v1503_v1 = vmax.f32 %v1449_v63, 0.0  ;;  %v1464_v3 = vadd.f32 %v2807_v0, %v3376_v38 }
 0x2a4   : > { %v1458_v4 = vpop.f32.mrf.mxu0 }
 0x2a5   : > { %v1459_v5 = vadd.f32 %v3376_v38, %v1458_v4  ;;  %2854 = vmatprep.mubr.msk.f32.mxu1 %vm791_vm1, %v1503_v1  ;;  %v1506_v8 = vmax.f32 %v1464_v3, 0.0 }
 0x2a6   : > { %v2810_v6 = vpop.f32.mrf.mxu0  ;;  %2855 = vmatmul.mubr.msk.f32.gmra.mxu1 %vm791_vm1, %v1504_v2 }
 0x2a7   : > { %v1505_v7 = vmax.f32 %v1459_v5, 0.0  ;;  %v1474_v9 = vadd.f32 %v2810_v6, %v3376_v38 }
 0x2a8   : > { %v1468_v10 = vpop.f32.mrf.mxu0 }
 0x2a9   : > { %v1469_v11 = vadd.f32 %v3376_v38, %v1468_v10  ;;  %2857 = vmatprep.mubr.msk.f32.mxu1 %vm791_vm1, %v1505_v7  ;;  %v1508_v13 = vmax.f32 %v1474_v9, 0.0 }
 0x2aa   : > { %2858 = vmatmul.mubr.msk.f32.gmra.mxu1 %vm791_vm1, %v1506_v8 }
 0x2ab   : > { %v1507_v12 = vmax.f32 %v1469_v11, 0.0 }
 0x2ad   : > { %2860 = vmatprep.mubr.msk.f32.mxu1 %vm791_vm1, %v1507_v12 }
 0x2ae   : > { %2861 = vmatmul.mubr.msk.f32.gmra.mxu1 %vm791_vm1, %v1508_v13 }
 0x332   : > { %v2817_v15 = vpop.f32.mrf.mxu1 }
 0x333   : > { %v1686_v16 = vadd.f32 %v2817_v15, %v3445_v14 }
 0x334   : > { %v1680_v17 = vpop.f32.mrf.mxu1 }
 0x335   : > { %v1681_v38 = vadd.f32 %v3445_v14, %v1680_v17  ;;  %v1840_v20 = vmax.f32 %v1686_v16, 0.0 }
 0x336   : > { %v2820_v18 = vpop.f32.mrf.mxu1 }
 0x337   : > { %v1839_v19 = vmax.f32 %v1681_v38, 0.0  ;;  %v1696_v21 = vadd.f32 %v2820_v18, %v3445_v14 }
 0x338   : > { %v1690_v22 = vpop.f32.mrf.mxu1 }
 0x339   : > { %v1691_v23 = vadd.f32 %v3445_v14, %v1690_v22  ;;  %2865 = vmatprep.mubr.msk.f32.mxu0 %vm428_vm0, %v1839_v19  ;;  %v1842_v26 = vmax.f32 %v1696_v21, 0.0 }
 0x33a   : > { %v2823_v24 = vpop.f32.mrf.mxu1  ;;  %2866 = vmatmul.mubr.msk.f32.vlgmr.msra.gmra.mxu0 %vm428_vm0, %v1840_v20 }
 0x33b   : > { %v1841_v25 = vmax.f32 %v1691_v23, 0.0  ;;  %v1706_v27 = vadd.f32 %v2823_v24, %v3445_v14 }
 0x33c   : > { %v1700_v28 = vpop.f32.mrf.mxu1 }
 0x33d   : > { %v1701_v29 = vadd.f32 %v3445_v14, %v1700_v28  ;;  %2868 = vmatprep.mubr.msk.f32.mxu0 %vm428_vm0, %v1841_v25  ;;  %v1844_v32 = vmax.f32 %v1706_v27, 0.0 }
 0x33e   : > { %v2826_v30 = vpop.f32.mrf.mxu1  ;;  %2869 = vmatmul.mubr.msk.f32.gmra.mxu0 %vm428_vm0, %v1842_v26 }
 0x33f   : > { %v1843_v31 = vmax.f32 %v1701_v29, 0.0  ;;  %v1716_v33 = vadd.f32 %v2826_v30, %v3445_v14 }
 0x340   : > { %v1710_v34 = vpop.f32.mrf.mxu1 }
 0x341   : > { %v1711_v35 = vadd.f32 %v3445_v14, %v1710_v34  ;;  %2871 = vmatprep.mubr.msk.f32.mxu0 %vm428_vm0, %v1843_v31  ;;  %v1846_v39 = vmax.f32 %v1716_v33, 0.0 }
 0x342   : > { %v2829_v36 = vpop.f32.mrf.mxu1  ;;  %2872 = vmatmul.mubr.msk.f32.gmra.mxu0 %vm428_vm0, %v1844_v32 }
 0x343   : > { %v1845_v37 = vmax.f32 %v1711_v35, 0.0  ;;  %v1726_v40 = vadd.f32 %v2829_v36, %v3445_v14 }
 0x344   : > { %v1720_v41 = vpop.f32.mrf.mxu1 }
 0x345   : > { %v1721_v42 = vadd.f32 %v3445_v14, %v1720_v41  ;;  %2874 = vmatprep.mubr.msk.f32.mxu0 %vm428_vm0, %v1845_v37  ;;  %v1848_v45 = vmax.f32 %v1726_v40, 0.0 }
 0x346   : > { %v2832_v43 = vpop.f32.mrf.mxu1  ;;  %2875 = vmatmul.mubr.msk.f32.gmra.mxu0 %vm428_vm0, %v1846_v39 }
 0x347   : > { %v1847_v44 = vmax.f32 %v1721_v42, 0.0  ;;  %v1736_v46 = vadd.f32 %v2832_v43, %v3445_v14 }
 0x348   : > { %v1730_v47 = vpop.f32.mrf.mxu1 }
 0x349   : > { %v1731_v48 = vadd.f32 %v3445_v14, %v1730_v47  ;;  %2877 = vmatprep.mubr.msk.f32.mxu0 %vm428_vm0, %v1847_v44  ;;  %v1850_v51 = vmax.f32 %v1736_v46, 0.0 }
 0x34a   : > { %v2835_v49 = vpop.f32.mrf.mxu1  ;;  %2878 = vmatmul.mubr.msk.f32.gmra.mxu0 %vm428_vm0, %v1848_v45 }
 0x34b   : > { %v1849_v50 = vmax.f32 %v1731_v48, 0.0  ;;  %v1746_v52 = vadd.f32 %v2835_v49, %v3445_v14  ;;  %v3517_v48 = vld [vmem:[%s3646_s10] ss:$0 sm:$0xff] }
 0x34c   : > { %v1740_v53 = vpop.f32.mrf.mxu1 }
 0x34d   : > { %v1741_v54 = vadd.f32 %v3445_v14, %v1740_v53  ;;  %2880 = vmatprep.mubr.msk.f32.mxu0 %vm428_vm0, %v1849_v50  ;;  %v1852_v57 = vmax.f32 %v1746_v52, 0.0 }
 0x34e   : > { %v2838_v55 = vpop.f32.mrf.mxu1  ;;  %2881 = vmatmul.mubr.msk.f32.gmra.mxu0 %vm428_vm0, %v1850_v51 }
 0x34f   : > { %v1851_v56 = vmax.f32 %v1741_v54, 0.0  ;;  %v1756_v58 = vadd.f32 %v2838_v55, %v3445_v14 }
 0x350   : > { %v1750_v59 = vpop.f32.mrf.mxu1 }
 0x351   : > { %v1751_v60 = vadd.f32 %v3445_v14, %v1750_v59  ;;  %2883 = vmatprep.mubr.msk.f32.mxu0 %vm428_vm0, %v1851_v56  ;;  %v1854_v63 = vmax.f32 %v1756_v58, 0.0 }
 0x352   : > { %v2841_v61 = vpop.f32.mrf.mxu1  ;;  %2884 = vmatmul.mubr.msk.f32.gmra.mxu0 %vm428_vm0, %v1852_v57 }
 0x353   : > { %v1853_v62 = vmax.f32 %v1751_v60, 0.0  ;;  %v1766_v0 = vadd.f32 %v2841_v61, %v3445_v14 }
 0x354   : > { %v1760_v1 = vpop.f32.mrf.mxu1 }
 0x355   : > { %v1761_v2 = vadd.f32 %v3445_v14, %v1760_v1  ;;  %2886 = vmatprep.mubr.msk.f32.mxu0 %vm428_vm0, %v1853_v62  ;;  %v1856_v5 = vmax.f32 %v1766_v0, 0.0 }
 0x356   : > { %v2844_v3 = vpop.f32.mrf.mxu1  ;;  %2887 = vmatmul.mubr.msk.f32.gmra.mxu0 %vm428_vm0, %v1854_v63 }
 0x357   : > { %v1855_v4 = vmax.f32 %v1761_v2, 0.0  ;;  %v1776_v6 = vadd.f32 %v2844_v3, %v3445_v14 }
 0x358   : > { %v1770_v7 = vpop.f32.mrf.mxu1 }
 0x359   : > { %v1771_v8 = vadd.f32 %v3445_v14, %v1770_v7  ;;  %2889 = vmatprep.mubr.msk.f32.mxu0 %vm428_vm0, %v1855_v4  ;;  %v1858_v11 = vmax.f32 %v1776_v6, 0.0 }
 0x35a   : > { %v2847_v9 = vpop.f32.mrf.mxu1  ;;  %2890 = vmatmul.mubr.msk.f32.gmra.mxu0 %vm428_vm0, %v1856_v5 }
 0x35b   : > { %v1857_v10 = vmax.f32 %v1771_v8, 0.0  ;;  %v1786_v12 = vadd.f32 %v2847_v9, %v3445_v14 }
 0x35c   : > { %v1780_v13 = vpop.f32.mrf.mxu1 }
 0x35d   : > { %v1781_v15 = vadd.f32 %v3445_v14, %v1780_v13  ;;  %2892 = vmatprep.mubr.msk.f32.mxu0 %vm428_vm0, %v1857_v10  ;;  %v1860_v38 = vmax.f32 %v1786_v12, 0.0 }
 0x35e   : > { %v2850_v16 = vpop.f32.mrf.mxu1  ;;  %2893 = vmatmul.mubr.msk.f32.gmra.mxu0 %vm428_vm0, %v1858_v11 }
 0x35f   : > { %v1859_v17 = vmax.f32 %v1781_v15, 0.0  ;;  %v1796_v18 = vadd.f32 %v2850_v16, %v3445_v14 }
 0x360   : > { %v1790_v19 = vpop.f32.mrf.mxu1 }
 0x361   : > { %v1791_v20 = vadd.f32 %v3445_v14, %v1790_v19  ;;  %2895 = vmatprep.mubr.msk.f32.mxu0 %vm428_vm0, %v1859_v17  ;;  %v1862_v23 = vmax.f32 %v1796_v18, 0.0 }
 0x362   : > { %v2853_v21 = vpop.f32.mrf.mxu1  ;;  %2896 = vmatmul.mubr.msk.f32.gmra.mxu0 %vm428_vm0, %v1860_v38 }
 0x363   : > { %v1861_v22 = vmax.f32 %v1791_v20, 0.0  ;;  %v1806_v24 = vadd.f32 %v2853_v21, %v3445_v14 }
 0x364   : > { %v1800_v25 = vpop.f32.mrf.mxu1 }
 0x365   : > { %v1801_v26 = vadd.f32 %v3445_v14, %v1800_v25  ;;  %2898 = vmatprep.mubr.msk.f32.mxu0 %vm428_vm0, %v1861_v22  ;;  %v1864_v29 = vmax.f32 %v1806_v24, 0.0 }
 0x366   : > { %v2856_v27 = vpop.f32.mrf.mxu1  ;;  %2899 = vmatmul.mubr.msk.f32.gmra.mxu0 %vm428_vm0, %v1862_v23 }
 0x367   : > { %v1863_v28 = vmax.f32 %v1801_v26, 0.0  ;;  %v1816_v30 = vadd.f32 %v2856_v27, %v3445_v14 }
 0x368   : > { %v1810_v31 = vpop.f32.mrf.mxu1 }
 0x369   : > { %v1811_v32 = vadd.f32 %v3445_v14, %v1810_v31  ;;  %2901 = vmatprep.mubr.msk.f32.mxu0 %vm428_vm0, %v1863_v28  ;;  %v1866_v35 = vmax.f32 %v1816_v30, 0.0 }
 0x36a   : > { %v2859_v33 = vpop.f32.mrf.mxu1  ;;  %2902 = vmatmul.mubr.msk.f32.gmra.mxu0 %vm428_vm0, %v1864_v29 }
 0x36b   : > { %v1865_v34 = vmax.f32 %v1811_v32, 0.0  ;;  %v1826_v36 = vadd.f32 %v2859_v33, %v3445_v14 }
 0x36c   : > { %v1820_v37 = vpop.f32.mrf.mxu1 }
 0x36d   : > { %v1821_v39 = vadd.f32 %v3445_v14, %v1820_v37  ;;  %2904 = vmatprep.mubr.msk.f32.mxu0 %vm428_vm0, %v1865_v34  ;;  %v1868_v42 = vmax.f32 %v1826_v36, 0.0 }
 0x36e   : > { %v2862_v40 = vpop.f32.mrf.mxu1  ;;  %2905 = vmatmul.mubr.msk.f32.gmra.mxu0 %vm428_vm0, %v1866_v35 }
 0x36f   : > { %v1867_v41 = vmax.f32 %v1821_v39, 0.0  ;;  %v1836_v43 = vadd.f32 %v2862_v40, %v3445_v14 }
 0x370   : > { %v1830_v44 = vpop.f32.mrf.mxu1 }
 0x371   : > { %v1831_v45 = vadd.f32 %v3445_v14, %v1830_v44  ;;  %2907 = vmatprep.mubr.msk.f32.mxu0 %vm428_vm0, %v1867_v41  ;;  %v1870_v47 = vmax.f32 %v1836_v43, 0.0 }
 0x372   : > { %2908 = vmatmul.mubr.msk.f32.gmra.mxu0 %vm428_vm0, %v1868_v42 }
 0x373   : > { %v1869_v46 = vmax.f32 %v1831_v45, 0.0 }
 0x375   : > { %2910 = vmatprep.mubr.msk.f32.mxu0 %vm428_vm0, %v1869_v46 }
 0x376   : > { %2911 = vmatmul.mubr.msk.f32.gmra.mxu0 %vm428_vm0, %v1870_v47 }
 0x3fa   : > { %v2867_v49 = vpop.f32.mrf.mxu0 }
 0x3fb   : > { %v2047_v14 = vadd.f32 %v2867_v49, %v3517_v48 }
 0x3fc   : > { %v2041_v50 = vpop.f32.mrf.mxu0 }
 0x3fd   : > { %2201 = vst [vmem:[%s3520_s15 + $0x8] sm:$0xff] %v2047_v14  ;;  %v2042_v51 = vadd.f32 %v3517_v48, %v2041_v50 }
 0x3fe   : > { %v2870_v52 = vpop.f32.mrf.mxu0 }
 0x3ff   : > { %2200 = vst [vmem:[%s3520_s15] sm:$0xff] %v2042_v51  ;;  %v2057_v53 = vadd.f32 %v2870_v52, %v3517_v48 }
 0x400   : > { %v2051_v54 = vpop.f32.mrf.mxu0 }
 0x401   : > { %2203 = vst [vmem:[%s3520_s15 + $0x18] sm:$0xff] %v2057_v53  ;;  %v2052_v55 = vadd.f32 %v3517_v48, %v2051_v54 }
 0x402   : > { %v2873_v56 = vpop.f32.mrf.mxu0 }
 0x403   : > { %2202 = vst [vmem:[%s3520_s15 + $0x10] sm:$0xff] %v2052_v55  ;;  %v2067_v57 = vadd.f32 %v2873_v56, %v3517_v48 }
 0x404   : > { %v2061_v58 = vpop.f32.mrf.mxu0 }
 0x405   : > { %2205 = vst [vmem:[%s3520_s15 + $0x28] sm:$0xff] %v2067_v57  ;;  %v2062_v59 = vadd.f32 %v3517_v48, %v2061_v58 }
 0x406   : > { %v2876_v60 = vpop.f32.mrf.mxu0 }
 0x407   : > { %2204 = vst [vmem:[%s3520_s15 + $0x20] sm:$0xff] %v2062_v59  ;;  %v2077_v61 = vadd.f32 %v2876_v60, %v3517_v48 }
 0x408   : > { %v2071_v62 = vpop.f32.mrf.mxu0 }
 0x409   : > { %2207 = vst [vmem:[%s3520_s15 + $0x38] sm:$0xff] %v2077_v61  ;;  %v2072_v63 = vadd.f32 %v3517_v48, %v2071_v62 }
 0x40a   : > { %v2879_v0 = vpop.f32.mrf.mxu0 }
 0x40b   : > { %2206 = vst [vmem:[%s3520_s15 + $0x30] sm:$0xff] %v2072_v63  ;;  %v2087_v1 = vadd.f32 %v2879_v0, %v3517_v48 }
 0x40c   : > { %v2081_v2 = vpop.f32.mrf.mxu0 }
 0x40d   : > { %2209 = vst [vmem:[%s3520_s15 + $0x48] sm:$0xff] %v2087_v1  ;;  %v2082_v3 = vadd.f32 %v3517_v48, %v2081_v2 }
 0x40e   : > { %v2882_v4 = vpop.f32.mrf.mxu0 }
 0x40f   : > { %2208 = vst [vmem:[%s3520_s15 + $0x40] sm:$0xff] %v2082_v3  ;;  %v2097_v5 = vadd.f32 %v2882_v4, %v3517_v48 }
 0x410   : > { %v2091_v6 = vpop.f32.mrf.mxu0 }
 0x411   : > { %2211 = vst [vmem:[%s3520_s15 + $0x58] sm:$0xff] %v2097_v5  ;;  %v2092_v7 = vadd.f32 %v3517_v48, %v2091_v6 }
 0x412   : > { %v2885_v8 = vpop.f32.mrf.mxu0 }
 0x413   : > { %2210 = vst [vmem:[%s3520_s15 + $0x50] sm:$0xff] %v2092_v7  ;;  %v2107_v9 = vadd.f32 %v2885_v8, %v3517_v48 }
 0x414   : > { %v2101_v10 = vpop.f32.mrf.mxu0 }
 0x415   : > { %2213 = vst [vmem:[%s3520_s15 + $0x68] sm:$0xff] %v2107_v9  ;;  %v2102_v11 = vadd.f32 %v3517_v48, %v2101_v10 }
 0x416   : > { %v2888_v12 = vpop.f32.mrf.mxu0 }
 0x417   : > { %2212 = vst [vmem:[%s3520_s15 + $0x60] sm:$0xff] %v2102_v11  ;;  %v2117_v13 = vadd.f32 %v2888_v12, %v3517_v48 }
 0x418   : > { %v2111_v15 = vpop.f32.mrf.mxu0 }
 0x419   : > { %2215 = vst [vmem:[%s3520_s15 + $0x78] sm:$0xff] %v2117_v13  ;;  %v2112_v16 = vadd.f32 %v3517_v48, %v2111_v15 }
 0x41a   : > { %v2891_v17 = vpop.f32.mrf.mxu0 }
 0x41b   : > { %2214 = vst [vmem:[%s3520_s15 + $0x70] sm:$0xff] %v2112_v16  ;;  %v2127_v38 = vadd.f32 %v2891_v17, %v3517_v48 }
 0x41c   : > { %v2121_v18 = vpop.f32.mrf.mxu0 }
 0x41d   : > { %2217 = vst [vmem:[%s3520_s15 + $0x88] sm:$0xff] %v2127_v38  ;;  %v2122_v19 = vadd.f32 %v3517_v48, %v2121_v18 }
 0x41e   : > { %v2894_v20 = vpop.f32.mrf.mxu0 }
 0x41f   : > { %2216 = vst [vmem:[%s3520_s15 + $0x80] sm:$0xff] %v2122_v19  ;;  %v2137_v21 = vadd.f32 %v2894_v20, %v3517_v48 }
 0x420   : > { %v2131_v22 = vpop.f32.mrf.mxu0 }
 0x421   : > { %2219 = vst [vmem:[%s3520_s15 + $0x98] sm:$0xff] %v2137_v21  ;;  %v2132_v23 = vadd.f32 %v3517_v48, %v2131_v22 }
 0x422   : > { %v2897_v24 = vpop.f32.mrf.mxu0 }
 0x423   : > { %2218 = vst [vmem:[%s3520_s15 + $0x90] sm:$0xff] %v2132_v23  ;;  %v2147_v25 = vadd.f32 %v2897_v24, %v3517_v48 }
 0x424   : > { %v2141_v26 = vpop.f32.mrf.mxu0 }
 0x425   : > { %2221 = vst [vmem:[%s3520_s15 + $0xa8] sm:$0xff] %v2147_v25  ;;  %v2142_v27 = vadd.f32 %v3517_v48, %v2141_v26 }
 0x426   : > { %v2900_v28 = vpop.f32.mrf.mxu0 }
 0x427   : > { %2220 = vst [vmem:[%s3520_s15 + $0xa0] sm:$0xff] %v2142_v27  ;;  %v2157_v29 = vadd.f32 %v2900_v28, %v3517_v48 }
 0x428   : > { %v2151_v30 = vpop.f32.mrf.mxu0 }
 0x429   : > { %2223 = vst [vmem:[%s3520_s15 + $0xb8] sm:$0xff] %v2157_v29  ;;  %v2152_v31 = vadd.f32 %v3517_v48, %v2151_v30 }
 0x42a   : > { %v2903_v32 = vpop.f32.mrf.mxu0 }
 0x42b   : > { %2222 = vst [vmem:[%s3520_s15 + $0xb0] sm:$0xff] %v2152_v31  ;;  %v2167_v33 = vadd.f32 %v2903_v32, %v3517_v48 }
 0x42c   : > { %v2161_v34 = vpop.f32.mrf.mxu0 }
 0x42d   : > { %2225 = vst [vmem:[%s3520_s15 + $0xc8] sm:$0xff] %v2167_v33  ;;  %v2162_v35 = vadd.f32 %v3517_v48, %v2161_v34 }
 0x42e   : > { %v2906_v36 = vpop.f32.mrf.mxu0 }
 0x42f   : > { %2224 = vst [vmem:[%s3520_s15 + $0xc0] sm:$0xff] %v2162_v35  ;;  %v2177_v37 = vadd.f32 %v2906_v36, %v3517_v48 }
 0x430   : > { %v2171_v39 = vpop.f32.mrf.mxu0 }
 0x431   : > { %2227 = vst [vmem:[%s3520_s15 + $0xd8] sm:$0xff] %v2177_v37  ;;  %v2172_v40 = vadd.f32 %v3517_v48, %v2171_v39 }
 0x432   : > { %v2909_v41 = vpop.f32.mrf.mxu0 }
 0x433   : > { %2226 = vst [vmem:[%s3520_s15 + $0xd0] sm:$0xff] %v2172_v40  ;;  %v2187_v42 = vadd.f32 %v2909_v41, %v3517_v48 }
 0x434   : > { %v2181_v43 = vpop.f32.mrf.mxu0 }
 0x435   : > { %2229 = vst [vmem:[%s3520_s15 + $0xe8] sm:$0xff] %v2187_v42  ;;  %v2182_v44 = vadd.f32 %v3517_v48, %v2181_v43 }
 0x436   : > { %v2912_v45 = vpop.f32.mrf.mxu0 }
 0x437   : > { %2228 = vst [vmem:[%s3520_s15 + $0xe0] sm:$0xff] %v2182_v44  ;;  %v2197_v46 = vadd.f32 %v2912_v45, %v3517_v48 }
 0x438   : > { %v2191_v47 = vpop.f32.mrf.mxu0 }
 0x439   : > { %2231 = vst [vmem:[%s3520_s15 + $0xf8] sm:$0xff] %v2197_v46  ;;  %v2192_v49 = vadd.f32 %v3517_v48, %v2191_v47 }
 0x43b   : > { %2230 = vst [vmem:[%s3520_s15 + $0xf0] sm:$0xff] %v2192_v49 }
 0x43c   : > { %2969 = shalt.err (!%p2966_p3)
}
 0x43d   : > { %s2970_s30 = scalar_lea.hbm %s3587_s29, 4096  ;;  %s2974_s25 = scalar_lea.hbm %s3647_s11, 8192 }
 0x43e   : > { %p2971_p4 = scmp.ne.s32.totalorder %s3587_s29, %s2970_s30  ;;  %p2975_p9 = scmp.lt.s32.totalorder %s3587_s29, %s3647_s11 }
 0x43f   : > { %p2976_p10 = scmp.lt.s32.totalorder %s2974_s25, %s2970_s30 }
 0x440   : > { %p2972_p7 = pnand %p2971_p4, %p3119_p5 }
 0x441   : > { %p2977_p11 = por %p2976_p10, %p2975_p9 }
 0x442   : > { %p2973_p8 = pneg %p2972_p7 }
 0x444   : > { %p2978_p12 = pnand %p2977_p11, %p2973_p8 }
 0x446   : > { %2981 = shalt.err (!%p2978_p12)
}
 0x447   : > { %s3019_s12 = smov 128   ;;  %s3020_s14 = smov 8  }
 0x448   : > { %2915 = dma.vmem_to_hbm [thread:$0]  (%p3119_p5), %s3589_s22, 4096, %s3587_s29, %s3596_s21, %s3019_s12, %s3019_s12, %s3020_s14  }
 0x449 PF: > { %p2921_p13 = scmp.ge.s32.totalorder %s3016_s20, 2  ;;  %s2261_s16 = sand.u32 1, %s3004_s17  }
 0x44a   : > { %s2262_s0 = scalar_lea.sflag [#allocation3], %s2261_s16 }
 0x44b   : > { %p2918_p0 = pnand %p2921_p13, %p3123_p6 }
 0x44d   : > { %p2919_p1 = pneg %p2918_p0 }
 0x44f   : > { %2999 = dma.done.wait (%p2919_p1), %s2262_s0, 4096  }
 0x450   : > { %3001 = vsyncadd (%p2919_p1), %s2262_s0, 4294963200  ;;  %p21_p2 = scmp.ge.s32.totalorder %s3106_s23, 4   ;;  %s3652_s17 = smov %s3008_s18 }
 0x451   : > { %s3653_s18 = smov %s3012_s19  ;;  %s3654_s19 = smov %s3117_s26 }
 0x452   : > { %s3655_s20 = smov %s3106_s23  ;;  %23 = sbr.rel (!%p21_p2) target bundleno = 5 (0x5), region = 99 }
 0x457   :  { %2267 = vsyncpa [#allocation3], 1 }
 0x458   :  { %2269 = vsyncpa [#allocation3 + $0x1], 1 }

</bundles_post_ra>
